<compile_context>
chip_gen: v7x
topology: tpu7x:2x2x1
jax: 0.10.0
libtpu: 0.0.40
codegen_flags: <defaults>
</compile_context>

<pallas_src>
import functools

import jax
import jax.numpy as jnp
from jax.experimental import pallas as pl
from jax.experimental.pallas import tpu as pltpu


def _round_up(x, m):
    return (x + m - 1) // m * m


def _cdiv(a, b):
    return (a + b - 1) // b


# --------------------------------------------------------------------------
# Kernel
# --------------------------------------------------------------------------
def _policy_kernel(x_ref, w1_ref, w2_ref, wh_ref, b_ref, out_ref, *,
                   h_pad, head_pad):
    x = x_ref[...]                                    # (bt, S)       bf16

    b1 = b_ref[0:1, :h_pad]                           # (1, Hpad)     f32
    b2 = b_ref[1:2, :h_pad]                           # (1, Hpad)     f32
    bh = b_ref[2:3, :head_pad]                        # (1, HEADpad)  f32
    ls_mask = b_ref[3:4, :head_pad] > 0.5             # (1, HEADpad)  bool, 1 on log_std cols

    # hidden layer 1: bf16 MXU operands, f32 accumulate + f32 epilogue
    h1 = jnp.dot(x, w1_ref[...], preferred_element_type=jnp.float32) + b1
    h1 = jnp.maximum(h1, 0.0)

    # hidden layer 2
    h2 = jnp.dot(h1.astype(jnp.bfloat16), w2_ref[...],
                 preferred_element_type=jnp.float32) + b2
    h2 = jnp.maximum(h2, 0.0)

    # fused heads: columns [0, A) = mu, [A, 2A) = log_std, rest zero padding
    y = jnp.dot(h2.astype(jnp.bfloat16), wh_ref[...],
                preferred_element_type=jnp.float32) + bh

    # clamp(-20, 2) only on the log_std columns (mask broadcast over rows)
    out_ref[...] = jnp.where(ls_mask, jnp.clip(y, -20.0, 2.0), y).astype(
        out_ref.dtype)


# --------------------------------------------------------------------------
# One-time parameter preparation (hoisted out of the per-call wrapper)
# --------------------------------------------------------------------------
def prepare_params(params):
    """Pack & pad raw f32 params (w1,b1,w2,b2,wmu,bmu,wls,bls) once.

    Returns (packed_arrays, meta). Call this once, reuse the result for every
    forward call.
    """
    w1, b1, w2, b2, wmu, bmu, wls, bls = params
    S, H = w1.shape
    A = wmu.shape[1]

    h_pad = _round_up(H, 128)
    head_pad = _round_up(2 * A, 128)
    w_max = max(h_pad, head_pad)

    dt = jnp.bfloat16
    w1p = jnp.zeros((S, h_pad), dt).at[:, :H].set(w1.astype(dt))
    w2p = jnp.zeros((h_pad, h_pad), dt).at[:H, :H].set(w2.astype(dt))
    whp = (jnp.zeros((h_pad, head_pad), dt)
           .at[:H, :A].set(wmu.astype(dt))
           .at[:H, A:2 * A].set(wls.astype(dt)))
    # rows: 0=b1, 1=b2, 2=fused head bias, 3=log_std column mask, 4..7=pad
    bpk = (jnp.zeros((8, w_max), jnp.float32)
           .at[0, :H].set(b1.reshape(-1))
           .at[1, :H].set(b2.reshape(-1))
           .at[2, :A].set(bmu.reshape(-1))
           .at[2, A:2 * A].set(bls.reshape(-1))
           .at[3, A:2 * A].set(1.0))

    meta = dict(state_dim=S, hidden_dim=H, action_dim=A,
                h_pad=h_pad, head_pad=head_pad, w_max=w_max)
    return (w1p, w2p, whp, bpk), meta


# --------------------------------------------------------------------------
# Tiling heuristics
# --------------------------------------------------------------------------
def _vmem_bytes_estimate(bt, S, h_pad, head_pad, w_max):
    weights = 2 * 2 * (S * h_pad + h_pad * h_pad + h_pad * head_pad)  # bf16, 2 bufs
    bias = 2 * 8 * w_max * 4
    io = 2 * (bt * S * 2 + bt * head_pad * 4)                          # in bf16, out f32
    interm = bt * (2 * h_pad + 2 * head_pad) * 4                       # f32 temps
    return weights + bias + io + interm


def _choose_batch_tile(B, S, h_pad, head_pad, w_max):
    # Big tiles first: per-grid-step overhead ~0.35us; 512-1024-row tiles reach
    # ~85% of the HBM roofline vs ~63% at 256.  Multiple of 16 = native bf16
    # sublane packing.
    bt = min(1024, _round_up(B, 16))
    # v7x: guarantee >= 2 parallel grid steps for mid-sized batches so both
    # TensorCores get a step (dimension_semantics=("parallel",)).
    if _cdiv(_round_up(B, 16), bt) < 2 and B >= 32:
        bt = _round_up(_cdiv(B, 2), 16)
    # Keep resident weights + double-buffered I/O inside a conservative budget
    # (v7x physical VMEM is 64 MiB).
    while bt > 16 and _vmem_bytes_estimate(bt, S, h_pad, head_pad, w_max) > (48 << 20):
        bt = max(16, _round_up(bt // 2, 16))
    return bt


# --------------------------------------------------------------------------
# Forward wrapper
# --------------------------------------------------------------------------
def cont_gaussian_policy_forward(states, packed_params, meta):
    """states: [B, S] float32.  packed_params/meta from prepare_params().

    Returns (mu [B, A], log_std [B, A]) with log_std clamped to [-20, 2].
    """
    w1p, w2p, whp, bpk = packed_params
    S = meta["state_dim"]
    A = meta["action_dim"]
    h_pad = meta["h_pad"]
    head_pad = meta["head_pad"]
    w_max = meta["w_max"]

    B = states.shape[0]
    bt = _choose_batch_tile(B, S, h_pad, head_pad, w_max)
    b_pad = _round_up(B, bt)
    grid = (b_pad // bt,)

    # Only the batch dim is padded, and the pad output is already bf16 so the
    # dominant streamed operand is half the bytes and the kernel needs no cast
    # before the first dot.  The feature dim stays at its natural size S.
    xp = states.astype(jnp.bfloat16)
    if b_pad != B:
        xp = jnp.pad(xp, ((0, b_pad - B), (0, 0)))

    flops = 2 * b_pad * (S * h_pad + h_pad * h_pad + h_pad * head_pad)
    bytes_accessed = (xp.size * 2 + w1p.size * 2 + w2p.size * 2 + whp.size * 2
                      + bpk.size * 4 + b_pad * head_pad * 4)
    cost = pl.CostEstimate(flops=flops, transcendentals=0,
                           bytes_accessed=bytes_accessed)

    vmem_limit = min(100 << 20,
                     max(32 << 20,
                         2 * _vmem_bytes_estimate(bt, S, h_pad, head_pad, w_max)))

    kernel = functools.partial(_policy_kernel, h_pad=h_pad, head_pad=head_pad)

    out = pl.pallas_call(
        kernel,
        out_shape=jax.ShapeDtypeStruct((b_pad, head_pad), jnp.float32),
        grid=grid,
        in_specs=[
            pl.BlockSpec((bt, S), lambda i: (i, 0)),          # states tile (bf16)
            pl.BlockSpec((S, h_pad), lambda i: (0, 0)),        # w1 (VMEM-resident)
            pl.BlockSpec((h_pad, h_pad), lambda i: (0, 0)),    # w2 (VMEM-resident)
            pl.BlockSpec((h_pad, head_pad), lambda i: (0, 0)),  # fused head W
            pl.BlockSpec((8, w_max), lambda i: (0, 0)),        # packed biases + mask
        ],
        out_specs=pl.BlockSpec((bt, head_pad), lambda i: (i, 0)),
        compiler_params=pltpu.CompilerParams(
            dimension_semantics=("parallel",),
            vmem_limit_bytes=vmem_limit),
        cost_estimate=cost,
    )(xp, w1p, w2p, whp, bpk)

    # NOTE: if the caller can consume the fused (B, 2A) slab directly, return
    # out[:B, :2*A] once to skip one extra HBM pass over the padded slab.
    mu = out[:B, :A]
    log_std = out[:B, A:2 * A]
    return mu, log_std


# --------------------------------------------------------------------------
# Param init (mirrors torch.nn.Linear default init)
# --------------------------------------------------------------------------
def init_params(key, state_dim, hidden_dim, action_dim):
    ks = jax.random.split(key, 8)

    def lin(kw, kb, fan_in, fan_out):
        lim = 1.0 / jnp.sqrt(fan_in)
        w = jax.random.uniform(kw, (fan_in, fan_out), jnp.float32, -lim, lim)
        b = jax.random.uniform(kb, (1, fan_out), jnp.float32, -lim, lim)
        return w, b

    w1, b1 = lin(ks[0], ks[1], state_dim, hidden_dim)
    w2, b2 = lin(ks[2], ks[3], hidden_dim, hidden_dim)
    wmu, bmu = lin(ks[4], ks[5], hidden_dim, action_dim)
    wls, bls = lin(ks[6], ks[7], hidden_dim, action_dim)
    return (w1, b1, w2, b2, wmu, bmu, wls, bls)


if __name__ == "__main__":
    key = jax.random.PRNGKey(0)
    k_params, k_states = jax.random.split(key)

    batch, state_dim, hidden_dim, action_dim = 8, 16, 32, 8

    raw_params = init_params(k_params, state_dim, hidden_dim, action_dim)
    packed_params, meta = prepare_params(raw_params)   # one-time packing
    states = jax.random.normal(k_states, (batch, state_dim), jnp.float32)

    mu, log_std = cont_gaussian_policy_forward(states, packed_params, meta)
    jax.block_until_ready((mu, log_std))

    # Reference in plain JAX, mirroring the kernel's bf16-operand / f32-accum
    # matmuls (the math of the PyTorch forward, with MXU-equivalent precision).
    w1, b1, w2, b2, wmu, bmu, wls, bls = raw_params
    q = lambda a: a.astype(jnp.bfloat16).astype(jnp.float32)
    xb = q(states)
    h1 = jnp.maximum(xb @ q(w1) + b1, 0.0)
    h2 = jnp.maximum(q(h1) @ q(w2) + b2, 0.0)
    h2b = q(h2)
    mu_ref = h2b @ q(wmu) + bmu
    ls_ref = jnp.clip(h2b @ q(wls) + bls, -20.0, 2.0)

    assert mu.shape == (batch, action_dim) and log_std.shape == (batch, action_dim)
    assert jnp.allclose(mu, mu_ref, atol=1e-2, rtol=1e-2), "mu mismatch"
    assert jnp.allclose(log_std, ls_ref, atol=1e-2, rtol=1e-2), "log_std mismatch"

    print("KERNEL_OK")
</pallas_src>

<mosaic_0001>
module attributes {stable_mosaic.version = 11 : i64} {
  func.func @_policy_kernel(%arg0: i32, %arg1: memref<16x16xbf16, #tpu.memory_space<vmem>>, %arg2: memref<16x128xbf16, #tpu.memory_space<vmem>>, %arg3: memref<128x128xbf16, #tpu.memory_space<vmem>>, %arg4: memref<128x128xbf16, #tpu.memory_space<vmem>>, %arg5: memref<8x128xf32, #tpu.memory_space<vmem>>, %arg6: memref<16x128xf32, #tpu.memory_space<vmem>>) attributes {dimension_semantics = [#tpu.dimension_semantics<parallel>], iteration_bounds = array<i64: 1>, scalar_prefetch = 0 : i64, scratch_operands = 0 : i64, tpu.core_type = #tpu.core_type<tc>, window_params = [{transform_indices = @transform_0, window_bounds = array<i64: 16, 16>}, {pipeline_mode = #tpu.pipeline_mode<synchronous>, transform_indices = @transform_1, window_bounds = array<i64: 16, 128>}, {pipeline_mode = #tpu.pipeline_mode<synchronous>, transform_indices = @transform_2, window_bounds = array<i64: 128, 128>}, {pipeline_mode = #tpu.pipeline_mode<synchronous>, transform_indices = @transform_3, window_bounds = array<i64: 128, 128>}, {pipeline_mode = #tpu.pipeline_mode<synchronous>, transform_indices = @transform_4, window_bounds = array<i64: 8, 128>}, {transform_indices = @transform_5, window_bounds = array<i64: 16, 128>}]} {
    %c0 = arith.constant 0 : index
    %c0_0 = arith.constant 0 : index
    %0 = vector.load %arg1[%c0, %c0_0] : memref<16x16xbf16, #tpu.memory_space<vmem>>, vector<16x16xbf16>
    %c0_1 = arith.constant 0 : index
    %c0_2 = arith.constant 0 : index
    %1 = vector.load %arg5[%c0_1, %c0_2] : memref<8x128xf32, #tpu.memory_space<vmem>>, vector<1x128xf32>
    %c1 = arith.constant 1 : index
    %c0_3 = arith.constant 0 : index
    %2 = vector.load %arg5[%c1, %c0_3] : memref<8x128xf32, #tpu.memory_space<vmem>>, vector<1x128xf32>
    %c2 = arith.constant 2 : index
    %c0_4 = arith.constant 0 : index
    %3 = vector.load %arg5[%c2, %c0_4] : memref<8x128xf32, #tpu.memory_space<vmem>>, vector<1x128xf32>
    %c3 = arith.constant 3 : index
    %c0_5 = arith.constant 0 : index
    %4 = vector.load %arg5[%c3, %c0_5] : memref<8x128xf32, #tpu.memory_space<vmem>>, vector<1x128xf32>
    %cst = arith.constant 5.000000e-01 : f32
    %5 = vector.broadcast %cst : f32 to vector<1x128xf32>
    %6 = arith.cmpf ogt, %4, %5 : vector<1x128xf32>
    %c0_6 = arith.constant 0 : index
    %c0_7 = arith.constant 0 : index
    %7 = vector.load %arg2[%c0_6, %c0_7] : memref<16x128xbf16, #tpu.memory_space<vmem>>, vector<16x128xbf16>
    %cst_8 = arith.constant dense<0.000000e+00> : vector<16x128xf32>
    %8 = tpu.matmul %0, %7, %cst_8 {dimension_numbers = #tpu.dot_dimension_numbers<[1], [0], [0], [1], [0, 0, 1, 1], [], []>} : vector<16x16xbf16>, vector<16x128xbf16>, vector<16x128xf32> -> vector<16x128xf32>
    %9 = vector.broadcast %1 : vector<1x128xf32> to vector<16x128xf32>
    %10 = arith.addf %8, %9 : vector<16x128xf32>
    %cst_9 = arith.constant 0.000000e+00 : f32
    %11 = vector.broadcast %cst_9 : f32 to vector<16x128xf32>
    %12 = arith.maximumf %10, %11 : vector<16x128xf32>
    %13 = arith.truncf %12 : vector<16x128xf32> to vector<16x128xbf16>
    %c0_10 = arith.constant 0 : index
    %c0_11 = arith.constant 0 : index
    %14 = vector.load %arg3[%c0_10, %c0_11] : memref<128x128xbf16, #tpu.memory_space<vmem>>, vector<128x128xbf16>
    %cst_12 = arith.constant dense<0.000000e+00> : vector<16x128xf32>
    %15 = tpu.matmul %13, %14, %cst_12 {dimension_numbers = #tpu.dot_dimension_numbers<[1], [0], [0], [1], [0, 0, 1, 1], [], []>} : vector<16x128xbf16>, vector<128x128xbf16>, vector<16x128xf32> -> vector<16x128xf32>
    %16 = vector.broadcast %2 : vector<1x128xf32> to vector<16x128xf32>
    %17 = arith.addf %15, %16 : vector<16x128xf32>
    %cst_13 = arith.constant 0.000000e+00 : f32
    %18 = vector.broadcast %cst_13 : f32 to vector<16x128xf32>
    %19 = arith.maximumf %17, %18 : vector<16x128xf32>
    %20 = arith.truncf %19 : vector<16x128xf32> to vector<16x128xbf16>
    %c0_14 = arith.constant 0 : index
    %c0_15 = arith.constant 0 : index
    %21 = vector.load %arg4[%c0_14, %c0_15] : memref<128x128xbf16, #tpu.memory_space<vmem>>, vector<128x128xbf16>
    %cst_16 = arith.constant dense<0.000000e+00> : vector<16x128xf32>
    %22 = tpu.matmul %20, %21, %cst_16 {dimension_numbers = #tpu.dot_dimension_numbers<[1], [0], [0], [1], [0, 0, 1, 1], [], []>} : vector<16x128xbf16>, vector<128x128xbf16>, vector<16x128xf32> -> vector<16x128xf32>
    %23 = vector.broadcast %3 : vector<1x128xf32> to vector<16x128xf32>
    %24 = arith.addf %22, %23 : vector<16x128xf32>
    %cst_17 = arith.constant -2.000000e+01 : f32
    %cst_18 = arith.constant 2.000000e+00 : f32
    %25 = vector.broadcast %cst_17 : f32 to vector<16x128xf32>
    %26 = arith.maximumf %25, %24 : vector<16x128xf32>
    %27 = vector.broadcast %cst_18 : f32 to vector<16x128xf32>
    %28 = arith.minimumf %27, %26 : vector<16x128xf32>
    %29 = vector.shape_cast %6 : vector<1x128xi1> to vector<1x128xi1>
    %30 = vector.broadcast %29 : vector<1x128xi1> to vector<16x128xi1>
    %31 = arith.select %30, %28, %24 : vector<16x128xi1>, vector<16x128xf32>
    %c0_19 = arith.constant 0 : index
    %c0_20 = arith.constant 0 : index
    %32 = vector.load %arg6[%c0_19, %c0_20] : memref<16x128xf32, #tpu.memory_space<vmem>>, vector<16x128xf32>
    tpu.vector_store %arg6[%c0_19, %c0_20], %31 {strides = array<i32>} : memref<16x128xf32, #tpu.memory_space<vmem>>, vector<16x128xf32>,
    return
  }
  func.func @transform_0(%arg0: i32) -> (i32, i32) {
    %c0_i32 = arith.constant 0 : i32
    %c0_i32_0 = arith.constant 0 : i32
    return %arg0, %c0_i32 : i32, i32
  }
  func.func @transform_1(%arg0: i32) -> (i32, i32) {
    %c0_i32 = arith.constant 0 : i32
    %c0_i32_0 = arith.constant 0 : i32
    %c0_i32_1 = arith.constant 0 : i32
    return %c0_i32, %c0_i32_0 : i32, i32
  }
  func.func @transform_2(%arg0: i32) -> (i32, i32) {
    %c0_i32 = arith.constant 0 : i32
    %c0_i32_0 = arith.constant 0 : i32
    %c0_i32_1 = arith.constant 0 : i32
    return %c0_i32, %c0_i32_0 : i32, i32
  }
  func.func @transform_3(%arg0: i32) -> (i32, i32) {
    %c0_i32 = arith.constant 0 : i32
    %c0_i32_0 = arith.constant 0 : i32
    %c0_i32_1 = arith.constant 0 : i32
    return %c0_i32, %c0_i32_0 : i32, i32
  }
  func.func @transform_4(%arg0: i32) -> (i32, i32) {
    %c0_i32 = arith.constant 0 : i32
    %c0_i32_0 = arith.constant 0 : i32
    %c0_i32_1 = arith.constant 0 : i32
    return %c0_i32, %c0_i32_0 : i32, i32
  }
  func.func @transform_5(%arg0: i32) -> (i32, i32) {
    %c0_i32 = arith.constant 0 : i32
    %c0_i32_0 = arith.constant 0 : i32
    return %arg0, %c0_i32 : i32, i32
  }
}

</mosaic_0001>

<bundles_post_ra>
// kernel: tpu_custom_call.1
= control target key start
LH: loop header
LB: loop body
LE: loop exit
PB: predicated region body
PF: predicated region fallthrough
CT: control target
= control target key end

     0   :  { %10 = vsyncpa [#allocation3], 0  ;;  %s799_s0 = inlined_call_operand.hbm [shape: bf16[16,16], index: 0, kind: input, shape index: {}]   ;;  %s800_s1 = inlined_call_operand.hbm [shape: bf16[16,128], index: 1, kind: input, shape index: {}]   ;;  %s801_s2 = inlined_call_operand.hbm [shape: bf16[128,128], index: 2, kind: input, shape index: {}]   ;;  %s802_s3 = inlined_call_operand.hbm [shape: bf16[128,128], index: 3, kind: input, shape index: {}]   ;;  %s803_s4 = inlined_call_operand.vmem [shape: f32[8,128], index: 4, kind: input, shape index: {}]   ;;  %s804_s5 = inlined_call_operand.hbm [shape: f32[16,128], index: 5, kind: output, shape index: {}]  }
   0x1   :  { %11 = vsyncpa [#allocation6], 0 }
   0x2   :  { %12 = vsyncpa [#allocation9], 0 }
   0x3   :  { %13 = vsyncpa [#allocation4], 0  ;;  %s639_s18 = smov [#allocation5]   ;;  %s640_s20 = smov [#allocation2]  }
   0x4   :  { %s31_s19 = sshll.u32 %s639_s18, 4  ;;  %s19_s21 = sshll.u32 %s640_s20, 4  ;;  %s32_s19 = int_to_ptr.vmem [resolvable:$true] %s31_s19  ;;  %s681_s21 = int_to_ptr.vmem [resolvable:$true] %s19_s21 }
   0x5   :  { %s521_s24 = scalar_lea.hbm %s800_s1, 128 }
   0x6   :  { %p522_p0 = scmp.ne.s32.totalorder %s800_s1, %s521_s24  ;;  %p525_p1 = scmp.lt.u32.totalorder %s521_s24, %s800_s1 }
   0x8   :  { %p527_p2 = pnand %p525_p1, %p522_p0 }
   0xa   :  { %530 = shalt.err (!%p527_p2)
}
   0xb   :  { %s531_s29 = scalar_lea.vmem %s32_s19, 128  ;;  %p536_p4 = scmp.lt.s32.totalorder %s32_s19, %s32_s19 }
   0xc   :  { %p532_p3 = scmp.ne.s32.totalorder %s32_s19, %s531_s29  ;;  %p537_p5 = scmp.lt.s32.totalorder %s531_s29, %s531_s29 }
   0xe   :  { %p538_p6 = por %p537_p5, %p536_p4 }
  0x10   :  { %p539_p7 = pnand %p538_p6, %p532_p3 }
  0x12   :  { %542 = shalt.err (!%p539_p7)
}
  0x13   :  { %s641_s30 = smov 64   ;;  %s642_s6 = smov 4  }
  0x14   :  { %37 = dma.hbm_to_vmem [thread:$0]  %s800_s1, 128, %s32_s19, [#allocation6], %s641_s30, %s641_s30, %s642_s6  }
  0x15   :  { %s543_s11 = scalar_lea.hbm %s799_s0, 128 }
  0x16   :  { %p544_p8 = scmp.ne.s32.totalorder %s799_s0, %s543_s11  ;;  %p547_p9 = scmp.lt.u32.totalorder %s543_s11, %s799_s0 }
  0x18   :  { %p549_p10 = pnand %p547_p9, %p544_p8 }
  0x1a   :  { %552 = shalt.err (!%p549_p10)
}
  0x1b   :  { %s553_s16 = scalar_lea.vmem %s681_s21, 128  ;;  %p558_p12 = scmp.lt.s32.totalorder %s681_s21, %s681_s21 }
  0x1c   :  { %p554_p11 = scmp.ne.s32.totalorder %s681_s21, %s553_s16  ;;  %p559_p13 = scmp.lt.s32.totalorder %s553_s16, %s553_s16 }
  0x1e   :  { %p560_p0 = por %p559_p13, %p558_p12 }
  0x20   :  { %p561_p1 = pnand %p560_p0, %p554_p11 }
  0x22   :  { %564 = shalt.err (!%p561_p1)
}
  0x23   :  { %25 = dma.hbm_to_vmem [thread:$0]  %s799_s0, 128, %s681_s21, [#allocation3], %s641_s30, %s641_s30, %s642_s6  }
  0x24   :  { %s643_s18 = smov [#allocation7]   ;;  %s644_s20 = smov [#allocation8]  }
  0x25   :  { %s43_s19 = sshll.u32 %s643_s18, 4  ;;  %s55_s22 = sshll.u32 %s644_s20, 4  ;;  %s44_s19 = int_to_ptr.vmem [resolvable:$true] %s43_s19  ;;  %s718_s22 = int_to_ptr.vmem [resolvable:$true] %s55_s22 }
  0x26   :  { %s565_s25 = scalar_lea.hbm %s801_s2, 1024 }
  0x27   :  { %p566_p2 = scmp.ne.s32.totalorder %s801_s2, %s565_s25  ;;  %p569_p3 = scmp.lt.u32.totalorder %s565_s25, %s801_s2 }
  0x29   :  { %p571_p4 = pnand %p569_p3, %p566_p2 }
  0x2b   :  { %574 = shalt.err (!%p571_p4)
}
  0x2c   :  { %s575_s0 = scalar_lea.vmem %s44_s19, 1024  ;;  %p580_p6 = scmp.lt.s32.totalorder %s44_s19, %s44_s19 }
  0x2d   :  { %p576_p5 = scmp.ne.s32.totalorder %s44_s19, %s575_s0  ;;  %p581_p7 = scmp.lt.s32.totalorder %s575_s0, %s575_s0 }
  0x2f   :  { %p582_p8 = por %p581_p7, %p580_p6 }
  0x31   :  { %p583_p9 = pnand %p582_p8, %p576_p5 }
  0x33   :  { %586 = shalt.err (!%p583_p9)
}
  0x34   :  { %49 = dma.hbm_to_vmem [thread:$0]  %s801_s2, 1024, %s44_s19, [#allocation6], %s641_s30, %s641_s30, %s642_s6  }
  0x35   :  { %s587_s10 = scalar_lea.hbm %s802_s3, 1024 }
  0x36   :  { %p588_p10 = scmp.ne.s32.totalorder %s802_s3, %s587_s10  ;;  %p591_p11 = scmp.lt.u32.totalorder %s587_s10, %s802_s3 }
  0x38   :  { %p593_p12 = pnand %p591_p11, %p588_p10 }
  0x3a   :  { %596 = shalt.err (!%p593_p12)
}
  0x3b   :  { %s597_s15 = scalar_lea.vmem %s718_s22, 1024  ;;  %p602_p0 = scmp.lt.s32.totalorder %s718_s22, %s718_s22 }
  0x3c   :  { %p598_p13 = scmp.ne.s32.totalorder %s718_s22, %s597_s15  ;;  %p603_p1 = scmp.lt.s32.totalorder %s597_s15, %s597_s15 }
  0x3e   :  { %p604_p2 = por %p603_p1, %p602_p0 }
  0x40   :  { %p605_p3 = pnand %p604_p2, %p598_p13 }
  0x42   :  { %608 = shalt.err (!%p605_p3)
}
  0x43   :  { %61 = dma.hbm_to_vmem [thread:$0]  %s802_s3, 1024, %s718_s22, [#allocation9], %s641_s30, %s641_s30, %s642_s6  }
  0x44   :  { %631 = dma.done.wait [#allocation3], 128  }
  0x45   :  { %632 = vsyncadd [#allocation3], 4294967168 }
  0x46   :  { %633 = dma.done.wait [#allocation6], 1152  }
  0x47   :  { %634 = vsyncadd [#allocation6], 4294966144 }
  0x48   :  { %635 = dma.done.wait [#allocation9], 1024  }
  0x49   :  { %636 = vsyncadd [#allocation9], 4294966272  ;;  %v645_v0 = vmov 0.0   ;;  %vm646_vm0 = vmmov 0   ;;  %v503_v1 = vld [vmem:[#allocation5] sm:$0xff]   ;;  %v504_v2 = vld [vmem:[#allocation2] sm:$0xff]   ;;  %v375_v39 = vlaneseq }
  0x4a   :  { %445 = vmatprep.subr.bf16.mxu0 %v645_v0  ;;  %447 = vmatprep.mubr.msk.bf16.mxu0 %vm646_vm0, %v645_v0  ;;  %vm101_vm1 = vcmask 130048   ;;  %v505_v3 = vld [vmem:[#allocation7] sm:$0xff]   ;;  %v506_v4 = vld [vmem:[#allocation7 + $0x8] sm:$0xff]   ;;  %v507_v5 = vld [vmem:[#allocation7 + $0x10] sm:$0xff]   ;;  %v647_v43 = vmov 0   ;;  %s648_s22 = smov [#allocation10]  }
  0x4b   :  { %451 = vmatprep.subr.bf16.mxu1 %v645_v0  ;;  %467 = vmatprep.mubr.msk.bf16.mxu1 %vm646_vm0, %v645_v0  ;;  %v508_v6 = vld [vmem:[#allocation7 + $0x18] sm:$0xff]   ;;  %v509_v7 = vld [vmem:[#allocation7 + $0x20] sm:$0xff]   ;;  %v510_v8 = vld [vmem:[#allocation7 + $0x28] sm:$0xff]   ;;  %v376_v41 = vshrl.u32 %v375_v39, 7  ;;  %s389_s23 = sshll.u32 %s648_s22, 4  ;;  %s390_s23 = int_to_ptr.vmem [resolvable:$true] %s389_s23 }
  0x4c   :  { %446 = vmatpush3.bf16.msra.mxu0 %v503_v1  ;;  %452 = vmatpush3.bf16.msra.mxu1 %v505_v3  ;;  %v511_v9 = vld [vmem:[#allocation7 + $0x30] sm:$0xff]   ;;  %v512_v10 = vld [vmem:[#allocation7 + $0x38] sm:$0xff]   ;;  %v513_v11 = vld [vmem:[#allocation8] sm:$0xff]   ;;  %p614_p5 = scmp.lt.s32.totalorder %s390_s23, %s390_s23 }
  0x4d   :  { %471 = vmatprep.subr.bf16.mxu0 %v645_v0  ;;  %453 = vmatprep.subr.bf16.mxu1 %v645_v0  ;;  %v514_v12 = vld [vmem:[#allocation8 + $0x8] sm:$0xff]   ;;  %v515_v13 = vld [vmem:[#allocation8 + $0x10] sm:$0xff]   ;;  %v516_v14 = vld [vmem:[#allocation8 + $0x18] sm:$0xff]   ;;  %v377_v42 = vsub.s32 0, %v376_v41 }
  0x4e   :  { %v517_v15 = vld [vmem:[#allocation8 + $0x20] sm:$0xff]   ;;  %v518_v16 = vld [vmem:[#allocation8 + $0x28] sm:$0xff]   ;;  %v403_v17 = vld [vmem:[%s803_s4] ss:$0 sm:$0xff] }
  0x4f   :  { %448 = vmatmul.mubr.msk.bf16.vlgmr.msra.gmra.mrb[0].mxu0 %vm101_vm1, %v504_v2  ;;  %v519_v27 = vld [vmem:[#allocation8 + $0x30] sm:$0xff]   ;;  %v520_v28 = vld [vmem:[#allocation8 + $0x38] sm:$0xff]  }
  0x50   :  { %487 = vmatprep.mubr.msk.bf16.mxu0 %vm646_vm0, %v645_v0  ;;  %454 = vmatpush3.bf16.msra.mxu1 %v506_v4  ;;  %v407_v29 = vld [vmem:[%s803_s4 + $0x1] ss:$0 sm:$0xff]  ;;  %v82_v40 = vld [vmem:[%s803_s4 + $0x3] sm:$0x1]  ;;  %v416_v45 = vld [vmem:[%s803_s4 + $0x2] ss:$0 sm:$0xff] }
  0x51   :  { %455 = vmatprep.subr.bf16.mxu1 %v645_v0  ;;  %472 = vmatpush3.bf16.msra.mxu0 %v513_v11  ;;  %vm83_vm2 = vcmp.gt.f32.partialorder %v82_v40, 0.5  ;;  %s609_s4 = scalar_lea.vmem %s390_s23, 256 }
  0x52   :  { %473 = vmatprep.subr.bf16.mxu0 %v645_v0  ;;  %v374_v44 = vsel %vm83_vm2, 1, %v647_v43  ;;  %p610_p4 = scmp.ne.s32.totalorder %s390_s23, %s609_s4  ;;  %p615_p6 = scmp.lt.s32.totalorder %s609_s4, %s609_s4 }
  0x53   :  { %v378_v47 = vrot.slane %v374_v44, %v377_v42 }
  0x54   :  { %456 = vmatpush3.bf16.msra.mxu1 %v507_v5  ;;  %p616_p7 = por %p615_p6, %p614_p5 }
  0x55   :  { %457 = vmatprep.subr.bf16.mxu1 %v645_v0  ;;  %474 = vmatpush3.bf16.msra.mxu0 %v514_v12  ;;  %vm379_vm3 = vcmp.eq.s32.totalorder %v378_v47, 1 }
  0x56   :  { %475 = vmatprep.subr.bf16.mxu0 %v645_v0  ;;  %p617_p8 = pnand %p616_p7, %p610_p4 }
  0x58   :  { %458 = vmatpush3.bf16.msra.mxu1 %v508_v6 }
  0x59   :  { %459 = vmatprep.subr.bf16.mxu1 %v645_v0  ;;  %476 = vmatpush3.bf16.msra.mxu0 %v515_v13 }
  0x5a   :  { %477 = vmatprep.subr.bf16.mxu0 %v645_v0 }
  0x5c   :  { %460 = vmatpush3.bf16.msra.mxu1 %v509_v7 }
  0x5d   :  { %461 = vmatprep.subr.bf16.mxu1 %v645_v0  ;;  %478 = vmatpush3.bf16.msra.mxu0 %v516_v14 }
  0x5e   :  { %479 = vmatprep.subr.bf16.mxu0 %v645_v0 }
  0x60   :  { %462 = vmatpush3.bf16.msra.mxu1 %v510_v8 }
  0x61   :  { %463 = vmatprep.subr.bf16.mxu1 %v645_v0  ;;  %480 = vmatpush3.bf16.msra.mxu0 %v517_v15 }
  0x62   :  { %481 = vmatprep.subr.bf16.mxu0 %v645_v0 }
  0x64   :  { %464 = vmatpush3.bf16.msra.mxu1 %v511_v9 }
  0x65   :  { %465 = vmatprep.subr.bf16.mxu1 %v645_v0  ;;  %482 = vmatpush3.bf16.msra.mxu0 %v518_v16 }
  0x66   :  { %483 = vmatprep.subr.bf16.mxu0 %v645_v0 }
  0x68   :  { %466 = vmatpush3.bf16.msra.mxu1 %v512_v10 }
  0x69   :  { %484 = vmatpush3.bf16.msra.mxu0 %v519_v27 }
  0x6a   :  { %485 = vmatprep.subr.bf16.mxu0 %v645_v0 }
  0x6d   :  { %486 = vmatpush3.bf16.msra.mxu0 %v520_v28 }
 0x122   :  { %v139_v18 = vpop.f32.mrb[0].mxu0 }
 0x123   :  { %v140_v19 = vadd.f32 %v403_v17, %v139_v18  ;;  %v449_v20 = vpop.f32.mrb[1].mxu0 }
 0x124   :  { %v142_v21 = vpop.f32.mrb[2].mxu0 }
 0x125   :  { %v143_v22 = vadd.f32 %v403_v17, %v142_v21  ;;  %v450_v23 = vpop.f32.mrb[3].mxu0  ;;  %v146_v24 = vmax.f32 %v140_v19, 0.0 }
 0x127   :  { %v147_v25 = vmax.f32 %v143_v22, 0.0 }
 0x129   :  { %v148_v26 = vpack.c.bf16 %v147_v25, %v146_v24 }
 0x12b   :  { %468 = vmatmul.mubr.bf16.vlgmr.msra.gmra.mrb[0].mxu1 %v148_v26 }
 0x1fe   :  { %v251_v30 = vpop.f32.mrb[0].mxu1 }
 0x1ff   :  { %v252_v31 = vadd.f32 %v407_v29, %v251_v30  ;;  %v469_v32 = vpop.f32.mrb[1].mxu1 }
 0x200   :  { %v254_v33 = vpop.f32.mrb[2].mxu1 }
 0x201   :  { %v255_v34 = vadd.f32 %v407_v29, %v254_v33  ;;  %v470_v35 = vpop.f32.mrb[3].mxu1  ;;  %v258_v36 = vmax.f32 %v252_v31, 0.0 }
 0x203   :  { %v259_v37 = vmax.f32 %v255_v34, 0.0 }
 0x205   :  { %v260_v38 = vpack.c.bf16 %v259_v37, %v258_v36 }
 0x207   :  { %488 = vmatmul.mubr.bf16.vlgmr.msra.gmra.mrb[4].mxu0 %v260_v38 }
 0x2da   :  { %v363_v46 = vpop.f32.mrb[4].mxu0 }
 0x2db   :  { %v364_v48 = vadd.f32 %v416_v45, %v363_v46  ;;  %v489_v49 = vpop.f32.mrb[5].mxu0 }
 0x2dc   :  { %v366_v50 = vpop.f32.mrb[6].mxu0 }
 0x2dd   :  { %v370_v51 = vmax.f32 %v364_v48, -20.0  ;;  %v367_v52 = vadd.f32 %v416_v45, %v366_v50  ;;  %v490_v53 = vpop.f32.mrb[7].mxu0 }
 0x2df   :  { %v372_v54 = vmin.f32 %v370_v51, 2.0  ;;  %v371_v55 = vmax.f32 %v367_v52, -20.0 }
 0x2e1   :  { %v380_v56 = vsel %vm379_vm3, %v372_v54, %v364_v48  ;;  %v373_v57 = vmin.f32 %v371_v55, 2.0 }
 0x2e2   :  { %382 = vst [vmem:[#allocation10] sm:$0xff] %v380_v56 }
 0x2e3   :  { %v381_v58 = vsel %vm379_vm3, %v373_v57, %v367_v52 }
 0x2e4   :  { %383 = vst [vmem:[#allocation10 + $0x8] sm:$0xff] %v381_v58 }
 0x2e5   :  { %620 = shalt.err (!%p617_p8)
}
 0x2e6   :  { %s621_s26 = scalar_lea.hbm %s804_s5, 256 }
 0x2e7   :  { %p622_p9 = scmp.ne.s32.totalorder %s804_s5, %s621_s26  ;;  %p625_p10 = scmp.lt.u32.totalorder %s621_s26, %s804_s5 }
 0x2e9   :  { %p627_p11 = pnand %p625_p10, %p622_p9 }
 0x2eb   :  { %630 = shalt.err (!%p627_p11)
}
 0x2ec   :  { %s649_s21 = smov 128   ;;  %s650_s7 = smov 8  }
 0x2ed   :  { %395 = dma.vmem_to_hbm [thread:$0]  %s390_s23, 256, %s804_s5, [#allocation4], %s649_s21, %s649_s21, %s650_s7  }
 0x2ee   :  { %637 = dma.done.wait [#allocation4], 256  }
 0x2ef   :  { %638 = vsyncadd [#allocation4], 4294967040 }
 0x2f0   :  { %399 = vsyncpa [#allocation3], 1 }
 0x2f1   :  { %400 = vsyncpa [#allocation6], 1 }
 0x2f2   :  { %401 = vsyncpa [#allocation9], 1 }
 0x2f3   :  { %402 = vsyncpa [#allocation4], 1 }

</bundles_post_ra>
